<compile_context>
chip_gen: v5e
topology: v5e:2x2
jax: 0.10.0
libtpu: 0.0.40
codegen_flags: <defaults>
</compile_context>

<pallas_src>
import functools

import jax
import jax.numpy as jnp
from jax.experimental import pallas as pl
from jax.experimental.pallas import tpu as pltpu


def _round_up(a, b):
    return (a + b - 1) // b * b


def _patch_embed_kernel(x_ref, w_ref, p_ref, o_ref, *, embed_dim, eps):
    # x_ref: (tm, K)      bf16 patch rows (M zero-padded; K is the true C*p*p)
    # w_ref: (K, E_out)   bf16 flattened conv weight (E possibly zero-padded)
    # p_ref: (8, E_out)   f32; row 0 = conv bias, 1 = LN gamma, 2 = LN beta
    # o_ref: (tm, E_out)  output (padded E columns are written as 0)
    x = x_ref[...]
    w = w_ref[...]
    bias = p_ref[0:1, :]
    gamma = p_ref[1:2, :]
    beta = p_ref[2:3, :]

    # MXU matmul with f32 accumulation.  Padded E columns of (w, bias) are
    # exact zeros, so y == 0 there and sum(y) / sum(y*y) over all columns are
    # already the sums over the real embed_dim -> no lane mask needed.
    y = jnp.dot(x, w, preferred_element_type=jnp.float32) + bias   # (tm, E_out)

    inv_e = 1.0 / float(embed_dim)
    mean = jnp.sum(y, axis=-1, keepdims=True) * inv_e
    var = jnp.sum(y * y, axis=-1, keepdims=True) * inv_e - mean * mean
    inv = jax.lax.rsqrt(jnp.maximum(var, 0.0) + eps)               # EUP slot

    # gamma/beta are zero in padded columns -> padded output columns stay 0.
    o_ref[...] = (((y - mean) * inv) * gamma + beta).astype(o_ref.dtype)


def patch_embed_forward(x, conv_w, conv_b, ln_g, ln_b, *, patch_size,
                        eps=1e-5, out_dtype=jnp.bfloat16):
    """x: (B, C, H, W).  Returns (B, embed_dim, H//p, W//p) in `out_dtype`.

    Precision note: the matmul inputs are cast to bfloat16 (f32 accumulation
    and f32 LayerNorm math); callers comparing against an exact f32 conv
    should expect ~1e-2 scale differences.
    """
    B, C, H, W = x.shape
    p = patch_size
    E = conv_w.shape[0]
    Ho, Wo = H // p, W // p
    M = B * Ho * Wo
    K = C * p * p

    # Pad embed_dim to a lane-dense multiple of 128 only if waste <= 50%.
    E_lane = _round_up(E, 128)
    E_out = E_lane if 2 * E_lane <= 3 * E else E

    # Row tile: target ~2K rows per step, but always keep >= 2 grid steps so
    # both v7x TensorCores get work; tm is a multiple of 8, M padded to fit.
    n_steps = max(2, pl.cdiv(M, 2048))
    tm = _round_up(pl.cdiv(M, n_steps), 8)
    M_pad = n_steps * tm

    # im2col in XLA (one fused cast+transpose pass over x); bf16 halves it.
    # (B, C, Ho, p, Wo, p) -> (B, Ho, Wo, C, p, p) -> (M, K).  No K padding.
    xb = x.astype(jnp.bfloat16)
    patches = xb.reshape(B, C, Ho, p, Wo, p)
    patches = patches.transpose(0, 2, 4, 1, 3, 5).reshape(M, K)
    if M_pad > M:
        patches = jnp.pad(patches, ((0, M_pad - M), (0, 0)))

    # Conv weight (E, C, p, p) -> (K, E_out), zero-padded only along E.
    w_mat = conv_w.reshape(E, K).T.astype(jnp.bfloat16)
    if E_out > E:
        w_mat = jnp.pad(w_mat, ((0, 0), (0, E_out - E)))

    # Merge bias / gamma / beta into one resident, sublane-aligned operand.
    params = jnp.zeros((8, E_out), jnp.float32)
    params = params.at[0, :E].set(conv_b.astype(jnp.float32))
    params = params.at[1, :E].set(ln_g.astype(jnp.float32))
    params = params.at[2, :E].set(ln_b.astype(jnp.float32))

    # VMEM budget: double-buffered in/out tiles + resident weight/params,
    # capped against the real chip VMEM (v7x has 64 MiB, not 128).
    out_bytes = jnp.dtype(out_dtype).itemsize
    tile_bytes = (2 * tm * K * 2            # x tile (bf16), double-buffered
                  + 2 * tm * E_out * out_bytes   # out tile, double-buffered
                  + K * E_out * 2           # resident weight (bf16)
                  + 8 * E_out * 4)          # resident params (f32)
    try:
        phys = getattr(pltpu.get_tpu_info(), "vmem_capacity_bytes", None)
        vmem_cap = int(0.75 * phys) if phys else (48 << 20)
    except Exception:
        vmem_cap = 48 << 20
    vmem_limit = int(min(vmem_cap, max(8 << 20, 4 * tile_bytes)))

    out = pl.pallas_call(
        functools.partial(_patch_embed_kernel, embed_dim=E, eps=eps),
        out_shape=jax.ShapeDtypeStruct((M_pad, E_out), out_dtype),
        grid_spec=pltpu.PrefetchScalarGridSpec(
            num_scalar_prefetch=0,
            grid=(n_steps,),
            in_specs=[
                pl.BlockSpec((tm, K), lambda i: (i, 0)),
                pl.BlockSpec((K, E_out), lambda i: (0, 0)),   # resident
                pl.BlockSpec((8, E_out), lambda i: (0, 0)),   # resident
            ],
            out_specs=pl.BlockSpec((tm, E_out), lambda i: (i, 0)),
        ),
        compiler_params=pltpu.CompilerParams(
            dimension_semantics=("parallel",),
            vmem_limit_bytes=vmem_limit,
        ),
    )(patches, w_mat, params)

    # (M_pad, E_out) -> (M, E) -> (B, Ho, Wo, E) -> (B, E, Ho, Wo).
    out = out[:M, :E].reshape(B, Ho, Wo, E).transpose(0, 3, 1, 2)
    return out


def _reference_f32(x, conv_w, conv_b, ln_g, ln_b, *, patch_size, eps=1e-5):
    """Pure-JAX f32 reference mirroring the PyTorch forward (conv form)."""
    B, C, H, W = x.shape
    p = patch_size
    E = conv_w.shape[0]
    Ho, Wo = H // p, W // p
    y = jax.lax.conv_general_dilated(
        x, conv_w, window_strides=(p, p), padding="VALID",
        dimension_numbers=("NCHW", "OIHW", "NCHW"))
    y = y + conv_b.reshape(1, E, 1, 1)
    y = y.reshape(B, E, Ho * Wo).transpose(0, 2, 1)          # (B, N, E)
    mean = jnp.mean(y, axis=-1, keepdims=True)
    var = jnp.mean((y - mean) ** 2, axis=-1, keepdims=True)
    y = (y - mean) / jnp.sqrt(var + eps) * ln_g + ln_b
    return y.reshape(B, Ho, Wo, E).transpose(0, 3, 1, 2)


def _reference_bf16(x, conv_w, conv_b, ln_g, ln_b, *, patch_size, eps=1e-5):
    """Same math as the kernel (bf16 matmul, f32 accum + LN) in pure JAX."""
    B, C, H, W = x.shape
    p = patch_size
    E = conv_w.shape[0]
    Ho, Wo = H // p, W // p
    K = C * p * p
    patches = x.astype(jnp.bfloat16).reshape(B, C, Ho, p, Wo, p)
    patches = patches.transpose(0, 2, 4, 1, 3, 5).reshape(B * Ho * Wo, K)
    w = conv_w.reshape(E, K).T.astype(jnp.bfloat16)
    y = jnp.dot(patches, w, preferred_element_type=jnp.float32) + conv_b[None, :]
    mean = jnp.mean(y, axis=-1, keepdims=True)
    var = jnp.mean(y * y, axis=-1, keepdims=True) - mean * mean
    y = (y - mean) * jax.lax.rsqrt(jnp.maximum(var, 0.0) + eps) * ln_g + ln_b
    return y.reshape(B, Ho, Wo, E).transpose(0, 3, 1, 2)


if __name__ == "__main__":
    # Small shapes consistent with the module: img=16, patch=4, in_chans=4,
    # embed_dim=32.
    B, C, H, W = 2, 4, 16, 16
    patch = 4
    embed_dim = 32

    key = jax.random.PRNGKey(0)
    kx, kw, kb, kg, kbeta = jax.random.split(key, 5)

    x = jax.random.normal(kx, (B, C, H, W), dtype=jnp.float32)
    conv_w = jax.random.normal(kw, (embed_dim, C, patch, patch), dtype=jnp.float32) * 0.05
    conv_b = jax.random.normal(kb, (embed_dim,), dtype=jnp.float32) * 0.01
    ln_g = 1.0 + 0.1 * jax.random.normal(kg, (embed_dim,), dtype=jnp.float32)
    ln_b = 0.1 * jax.random.normal(kbeta, (embed_dim,), dtype=jnp.float32)

    ref_bf16 = _reference_bf16(x, conv_w, conv_b, ln_g, ln_b, patch_size=patch)
    ref_f32 = _reference_f32(x, conv_w, conv_b, ln_g, ln_b, patch_size=patch)

    # 1) f32-output run: tight numerical checks against the references.
    out_f32 = patch_embed_forward(x, conv_w, conv_b, ln_g, ln_b,
                                  patch_size=patch, out_dtype=jnp.float32)
    out_f32 = jax.block_until_ready(out_f32)
    assert out_f32.shape == (B, embed_dim, H // patch, W // patch), out_f32.shape
    assert bool(jnp.all(jnp.isfinite(out_f32))), "non-finite output"
    assert jnp.allclose(out_f32, ref_bf16, atol=1e-3, rtol=1e-3), \
        "mismatch vs bf16 reference (f32 output)"
    assert jnp.allclose(out_f32, ref_f32, atol=5e-2, rtol=5e-2), \
        "mismatch vs f32 conv reference (f32 output)"

    # 2) default bf16-output run (the performance path).
    out_bf = patch_embed_forward(x, conv_w, conv_b, ln_g, ln_b, patch_size=patch)
    out_bf = jax.block_until_ready(out_bf)
    assert out_bf.dtype == jnp.bfloat16, out_bf.dtype
    assert out_bf.shape == (B, embed_dim, H // patch, W // patch), out_bf.shape
    assert bool(jnp.all(jnp.isfinite(out_bf.astype(jnp.float32)))), "non-finite output"
    assert jnp.allclose(out_bf.astype(jnp.float32), ref_bf16, atol=3e-2, rtol=3e-2), \
        "mismatch vs bf16 reference (bf16 output)"

    print("KERNEL_OK")
</pallas_src>

<mosaic_0001>
module attributes {stable_mosaic.version = 11 : i64} {
  func.func @_patch_embed_kernel(%arg0: i32, %arg1: memref<16x64xbf16, #tpu.memory_space<vmem>>, %arg2: memref<64x32xbf16, #tpu.memory_space<vmem>>, %arg3: memref<8x32xf32, #tpu.memory_space<vmem>>, %arg4: memref<16x32xf32, #tpu.memory_space<vmem>>) attributes {dimension_semantics = [#tpu.dimension_semantics<parallel>], iteration_bounds = array<i64: 2>, scalar_prefetch = 0 : i64, scratch_operands = 0 : i64, tpu.core_type = #tpu.core_type<tc>, window_params = [{transform_indices = @transform_0, window_bounds = array<i64: 16, 64>}, {pipeline_mode = #tpu.pipeline_mode<synchronous>, transform_indices = @transform_1, window_bounds = array<i64: 64, 32>}, {pipeline_mode = #tpu.pipeline_mode<synchronous>, transform_indices = @transform_2, window_bounds = array<i64: 8, 32>}, {transform_indices = @transform_3, window_bounds = array<i64: 16, 32>}]} {
    %c0 = arith.constant 0 : index
    %c0_0 = arith.constant 0 : index
    %0 = vector.load %arg1[%c0, %c0_0] : memref<16x64xbf16, #tpu.memory_space<vmem>>, vector<16x64xbf16>
    %c0_1 = arith.constant 0 : index
    %c0_2 = arith.constant 0 : index
    %1 = vector.load %arg2[%c0_1, %c0_2] : memref<64x32xbf16, #tpu.memory_space<vmem>>, vector<64x32xbf16>
    %c0_3 = arith.constant 0 : index
    %c0_4 = arith.constant 0 : index
    %2 = vector.load %arg3[%c0_3, %c0_4] : memref<8x32xf32, #tpu.memory_space<vmem>>, vector<1x32xf32>
    %c1 = arith.constant 1 : index
    %c0_5 = arith.constant 0 : index
    %3 = vector.load %arg3[%c1, %c0_5] : memref<8x32xf32, #tpu.memory_space<vmem>>, vector<1x32xf32>
    %c2 = arith.constant 2 : index
    %c0_6 = arith.constant 0 : index
    %4 = vector.load %arg3[%c2, %c0_6] : memref<8x32xf32, #tpu.memory_space<vmem>>, vector<1x32xf32>
    %cst = arith.constant dense<0.000000e+00> : vector<16x32xf32>
    %5 = tpu.matmul %0, %1, %cst {dimension_numbers = #tpu.dot_dimension_numbers<[1], [0], [0], [1], [0, 0, 1, 1], [], []>} : vector<16x64xbf16>, vector<64x32xbf16>, vector<16x32xf32> -> vector<16x32xf32>
    %6 = vector.broadcast %2 : vector<1x32xf32> to vector<16x32xf32>
    %7 = arith.addf %5, %6 : vector<16x32xf32>
    %cst_7 = arith.constant dense<0.000000e+00> : vector<16xf32>
    %8 = vector.multi_reduction <add>, %7, %cst_7 [1] : vector<16x32xf32> to vector<16xf32>
    %9 = vector.shape_cast %8 : vector<16xf32> to vector<16x1xf32>
    %cst_8 = arith.constant 3.125000e-02 : f32
    %10 = vector.broadcast %cst_8 : f32 to vector<16x1xf32>
    %11 = arith.mulf %9, %10 : vector<16x1xf32>
    %12 = arith.mulf %7, %7 : vector<16x32xf32>
    %cst_9 = arith.constant dense<0.000000e+00> : vector<16xf32>
    %13 = vector.multi_reduction <add>, %12, %cst_9 [1] : vector<16x32xf32> to vector<16xf32>
    %14 = vector.shape_cast %13 : vector<16xf32> to vector<16x1xf32>
    %cst_10 = arith.constant 3.125000e-02 : f32
    %15 = vector.broadcast %cst_10 : f32 to vector<16x1xf32>
    %16 = arith.mulf %14, %15 : vector<16x1xf32>
    %17 = arith.mulf %11, %11 : vector<16x1xf32>
    %18 = arith.subf %16, %17 : vector<16x1xf32>
    %cst_11 = arith.constant 0.000000e+00 : f32
    %19 = vector.broadcast %cst_11 : f32 to vector<16x1xf32>
    %20 = arith.maximumf %18, %19 : vector<16x1xf32>
    %cst_12 = arith.constant 9.99999974E-6 : f32
    %21 = vector.broadcast %cst_12 : f32 to vector<16x1xf32>
    %22 = arith.addf %20, %21 : vector<16x1xf32>
    %23 = math.rsqrt %22 : vector<16x1xf32>
    %24 = vector.broadcast %11 : vector<16x1xf32> to vector<16x32xf32>
    %25 = arith.subf %7, %24 : vector<16x32xf32>
    %26 = vector.broadcast %23 : vector<16x1xf32> to vector<16x32xf32>
    %27 = arith.mulf %25, %26 : vector<16x32xf32>
    %28 = vector.broadcast %3 : vector<1x32xf32> to vector<16x32xf32>
    %29 = arith.mulf %27, %28 : vector<16x32xf32>
    %30 = vector.broadcast %4 : vector<1x32xf32> to vector<16x32xf32>
    %31 = arith.addf %29, %30 : vector<16x32xf32>
    %c0_13 = arith.constant 0 : index
    %c0_14 = arith.constant 0 : index
    %32 = vector.load %arg4[%c0_13, %c0_14] : memref<16x32xf32, #tpu.memory_space<vmem>>, vector<16x32xf32>
    tpu.vector_store %arg4[%c0_13, %c0_14], %31 {strides = array<i32>} : memref<16x32xf32, #tpu.memory_space<vmem>>, vector<16x32xf32>,
    return
  }
  func.func @transform_0(%arg0: i32) -> (i32, i32) {
    %c0_i32 = arith.constant 0 : i32
    %c0_i32_0 = arith.constant 0 : i32
    return %arg0, %c0_i32 : i32, i32
  }
  func.func @transform_1(%arg0: i32) -> (i32, i32) {
    %c0_i32 = arith.constant 0 : i32
    %c0_i32_0 = arith.constant 0 : i32
    %c0_i32_1 = arith.constant 0 : i32
    return %c0_i32, %c0_i32_0 : i32, i32
  }
  func.func @transform_2(%arg0: i32) -> (i32, i32) {
    %c0_i32 = arith.constant 0 : i32
    %c0_i32_0 = arith.constant 0 : i32
    %c0_i32_1 = arith.constant 0 : i32
    return %c0_i32, %c0_i32_0 : i32, i32
  }
  func.func @transform_3(%arg0: i32) -> (i32, i32) {
    %c0_i32 = arith.constant 0 : i32
    %c0_i32_0 = arith.constant 0 : i32
    return %arg0, %c0_i32 : i32, i32
  }
}

</mosaic_0001>

<bundles_post_ra>
// kernel: tpu_custom_call.1
= control target key start
LH: loop header
LB: loop body
LE: loop exit
PB: predicated region body
PF: predicated region fallthrough
CT: control target
= control target key end

     0   :  { %8 = vsyncpa [#allocation3], 0  ;;  %s659_s0 = inlined_call_operand.vmem [shape: bf16[32,64], index: 0, kind: input, shape index: {}]   ;;  %s660_s1 = inlined_call_operand.vmem [shape: bf16[64,32], index: 1, kind: input, shape index: {}]   ;;  %s661_s2 = inlined_call_operand.vmem [shape: f32[8,32], index: 2, kind: input, shape index: {}]   ;;  %s662_s3 = inlined_call_operand.hbm [shape: f32[32,32], index: 3, kind: output, shape index: {}]  }
   0x1   :  { %10 = vsyncpa [#allocation3 + $0x1], 0  ;;  %s544_s12 = smov 0   ;;  %s546_s13 = smov 0  }
   0x2   :  { %s548_s14 = smov 0   ;;  %s550_s15 = smov 0  }
   0x3 LB: > { %s565_s16 = sadd.s32 4294967295, %s520_s15   ;;  %s371_s17 = sadd.s32 4294967294, %s520_s15   ;;  %s520_s15 = sphi %s550_s15, %s668_s15   ;;  %s516_s14 = sphi %s548_s14, %s667_s14   ;;  %s512_s13 = sphi %s546_s13, %s666_s13   ;;  %s508_s12 = sphi %s544_s12, %s665_s12  }
   0x4   : > { %s569_s18 = sadd.s32 1, %s520_s15   ;;  %s91_s19 = sadd.s32 1, %s516_s14 }
   0x5   : > { %s88_s20 = ssub.s32 %s520_s15, %s569_s18  ;;  %p101_p0 = scmp.ne.s32.totalorder %s516_s14, %s512_s13 }
   0x6   : > { %p89_p1 = scmp.eq.s32.totalorder %s88_s20, 0  ;;  %p102_p2 = scmp.eq.s32.totalorder %s565_s16, 1 }
   0x7   : > { %p107_p3 = scmp.ne.s32.totalorder %s512_s13, %s508_s12  ;;  %p108_p4 = scmp.eq.s32.totalorder %s371_s17, 1 }
   0x8   : > { %s580_s21 = scalar_select %p89_p1, %s516_s14, %s91_s19  }
   0x9   : > { %p582_p5 = por %p102_p2, %p101_p0  ;;  %p586_p6 = por %p108_p4, %p107_p3 }
   0xa   : > { %p374_p7 = scmp.ge.s32.totalorder %s520_s15, 1  ;;  %p141_p8 = scmp.lt.s32.totalorder %s520_s15, 3 }
   0xc   : > { %p142_p9 = pnand %p374_p7, %p141_p8 }
   0xd   : > { %s376_s26 = sshll.u32 (!%p142_p9), %s565_s16, 1  ;;  %s162_s17 = sand.u32 (!%p142_p9), 1, %s512_s13  }
   0xe   : > { %145 = sbr.rel (%p142_p9) target bundleno = 326 (0x146), region = 32  ;;  %p166_p10 = scmp.lt.s32.totalorder (!%p142_p9), %s376_s26, 3 }
   0xf   : > { %s409_s27 = sshll.u32 (!%p142_p9), %s565_s16, 4  ;;  %s294_s6 = scalar_lea.sflag (!%p142_p9), [#allocation3], %s162_s17 }
  0x10   : > { %s478_s11 = scalar_lea.hbm (!%p142_p9), %s662_s3, 32 }
  0x13   : > { %v408_v0 = vld [vmem:[%s660_s1 + $0x18] sm:$0xff]  ;;  %v407_v1 = vld [vmem:[%s660_s1 + $0x10] sm:$0xff]  ;;  %s670_s26 = smov (!%p166_p10, %s376_s26), 3  ;;  %v406_v2 = vld [vmem:[%s660_s1 + $0x8] sm:$0xff]  ;;  %vm216_vm0 = vcmask 523264   ;;  %vm234_vm1 = vcmask 261120  }
  0x14   : > { %224 = vmatpush.bf16.msra.mxu0 %v408_v0  ;;  %s377_s4 = sshll.u32 %s670_s26, 2  ;;  %v405_v3 = vld [vmem:[%s660_s1] sm:$0xff]  ;;  %s375_s26 = sshll.u32 %s162_s17, 4 }
  0x15   : > { %s169_s9 = scalar_lea.vmem %s659_s0, %s377_s4  ;;  %v451_v5 = vld [vmem:[%s661_s2] ss:$0 sm:$0xff]  ;;  %v452_v40 = vld [vmem:[%s661_s2 + $0x1] ss:$0 sm:$0xff]  ;;  %v453_v44 = vld [vmem:[%s661_s2 + $0x2] ss:$0 sm:$0xff]  ;;  %s305_s4 = scalar_lea.hbm %s662_s3, %s409_s27 }
  0x16   : > { %v404_v4 = vld [vmem:[%s169_s9] sm:$0xff]  ;;  %s164_s28 = scalar_lea.vmem [#allocation2], %s375_s26  ;;  %s308_s16 = sshll.u32 %s305_s4, 4  ;;  %s309_s16 = int_to_ptr.hbm [resolvable:$true] %s308_s16 }
  0x17   : > { %s306_s5 = sshll.u32 %s164_s28, 4  ;;  %s472_s7 = sshra.s32 %s309_s16, 4  ;;  %s307_s5 = int_to_ptr.vmem [resolvable:$true] %s306_s5  ;;  %s473_s7 = int_to_ptr.hbm [resolvable:$true] %s472_s7 }
  0x18   : > { %225 = vmatpush.bf16.msra.mxu0 %v407_v1  ;;  %s474_s8 = scalar_lea.hbm %s473_s7, 16  ;;  %p479_p0 = scmp.lt.s32.totalorder %s473_s7, %s662_s3 }
  0x19   : > { %p475_p11 = scmp.ne.s32.totalorder %s473_s7, %s474_s8  ;;  %p480_p1 = scmp.lt.s32.totalorder %s478_s11, %s474_s8 }
  0x1b   : > { %p476_p12 = pnand %p475_p11, %p582_p5  ;;  %p481_p2 = por %p480_p1, %p479_p0 }
  0x1c   : > { %226 = vmatpush.bf16.msra.mxu0 %v406_v2 }
  0x1d   : > { %p477_p13 = pneg %p476_p12 }
  0x1f   : > { %p482_p3 = pnand %p481_p2, %p477_p13 }
  0x20   : > { %227 = vmatpush.bf16.msra.mxu0 %v405_v3 }
  0x23   : > { %398 = vmatmul.msk.bf16.vlgmr.msra.gmra.mxu0 %vm216_vm0, %v404_v4 }
  0xa0   : > { %v229_v6 = vpop.f32.mrf.mxu0 }
  0xa1   : > { %v230_v7 = vadd.f32 %v451_v5, %v229_v6 }
  0xa3   : > { %v235_v8 = vsel %vm234_vm1, %v230_v7, 0.0  ;;  %v243_v9 = vmul.f32 %v230_v7, %v230_v7 }
  0xa4   : > { %236 = vadd.xlane.f32.xlu0 %v235_v8 }
  0xa5   : > { %v245_v10 = vsel %vm234_vm1, %v243_v9, 0.0 }
  0xa6   : > { %246 = vadd.xlane.f32.xlu1 %v245_v10 }
  0xa8   : > { %v231_v11 = vpop.f32.mrf.mxu0 }
  0xa9   : > { %v232_v12 = vadd.f32 %v451_v5, %v231_v11 }
  0xab   : > { %v238_v13 = vsel %vm234_vm1, %v232_v12, 0.0  ;;  %v244_v14 = vmul.f32 %v232_v12, %v232_v12 }
  0xac   : > { %239 = vadd.xlane.f32.xlu0 %v238_v13 }
  0xad   : > { %v248_v15 = vsel %vm234_vm1, %v244_v14, 0.0 }
  0xae   : > { %249 = vadd.xlane.f32.xlu1 %v248_v15 }
 0x117   : > { %v237_v16 = vpop.xlane.xlu0 %236 }
 0x118   : > { %v241_v17 = vmul.f32 0.03125, %v237_v16 }
 0x119   : > { %v247_v18 = vpop.xlane.xlu1 %246 }
 0x11a   : > { %v253_v19 = vmul.f32 %v241_v17, %v241_v17  ;;  %v251_v20 = vmul.f32 0.03125, %v247_v18  ;;  %v281_v39 = vsub.f32 %v230_v7, %v241_v17 }
 0x11c   : > { %v255_v21 = vsub.f32 %v251_v20, %v253_v19 }
 0x11e   : > { %v257_v22 = vmax.f32 %v255_v21, 0.0 }
 0x11f   : > { %v240_v23 = vpop.xlane.xlu0 %239 }
 0x120   : > { %v259_v24 = vadd.f32 1e-05, %v257_v22  ;;  %v242_v25 = vmul.f32 0.03125, %v240_v23 }
 0x121   : > { %v250_v26 = vpop.xlane.xlu1 %249 }
 0x122   : > { %454 = vrsqrt.f32 %v259_v24  ;;  %v254_v27 = vmul.f32 %v242_v25, %v242_v25  ;;  %v252_v28 = vmul.f32 0.03125, %v250_v26  ;;  %vm267_vm3 = vweird.f32 %v259_v24 }
 0x123   : > { %v282_v51 = vsub.f32 %v232_v12, %v242_v25 }
 0x124   : > { %v256_v29 = vsub.f32 %v252_v28, %v254_v27 }
 0x126   : > { %v258_v30 = vmax.f32 %v256_v29, 0.0 }
 0x128   : > { %v455_v31 = vpop.eup %454  ;;  %v260_v33 = vadd.f32 1e-05, %v258_v30 }
 0x129   : > { %v262_v32 = vmul.f32 %v455_v31, %v259_v24  ;;  %vm268_vm2 = vweird.f32 %v455_v31 }
 0x12a   : > { %456 = vrsqrt.f32 %v260_v33  ;;  %vm269_vm4 = vmor %vm267_vm3, %vm268_vm2  ;;  %vm277_vm6 = vweird.f32 %v260_v33 }
 0x12b   : > { %v263_v34 = vmul.f32 %v455_v31, %v262_v32 }
 0x12d   : > { %v264_v35 = vmul.f32 0.5, %v263_v34 }
 0x12f   : > { %v265_v36 = vsub.f32 1.5, %v264_v35 }
 0x130   : > { %v457_v37 = vpop.eup %456 }
 0x131   : > { %v266_v38 = vmul.f32 %v455_v31, %v265_v36  ;;  %v272_v41 = vmul.f32 %v457_v37, %v260_v33  ;;  %vm278_vm5 = vweird.f32 %v457_v37 }
 0x132   : > { %vm279_vm7 = vmor %vm277_vm6, %vm278_vm5 }
 0x133   : > { %v270_v42 = vsel %vm269_vm4, %v455_v31, %v266_v38  ;;  %v273_v45 = vmul.f32 %v457_v37, %v272_v41 }
 0x134   : > { %v283_v43 = vmul.f32 %v281_v39, %v270_v42 }
 0x135   : > { %v274_v47 = vmul.f32 0.5, %v273_v45 }
 0x136   : > { %v286_v46 = vmul.f32 %v452_v40, %v283_v43 }
 0x137   : > { %v275_v48 = vsub.f32 1.5, %v274_v47 }
 0x138   : > { %v289_v49 = vadd.f32 %v453_v44, %v286_v46 }
 0x139   : > { %v276_v50 = vmul.f32 %v457_v37, %v275_v48 }
 0x13a   : > { %291 = vst.msk [vmem:[%s164_s28] sm:$0xff] %vm234_vm1, %v289_v49 }
 0x13b   : > { %v280_v52 = vsel %vm279_vm7, %v457_v37, %v276_v50 }
 0x13c   : > { %v284_v53 = vmul.f32 %v282_v51, %v280_v52 }
 0x13e   : > { %v287_v54 = vmul.f32 %v452_v40, %v284_v53 }
 0x140   : > { %v290_v55 = vadd.f32 %v453_v44, %v287_v54 }
 0x142   : > { %292 = vst.msk [vmem:[%s164_s28 + $0x8] sm:$0xff] %vm234_vm1, %v290_v55 }
 0x143   : > { %485 = shalt.err (!%p482_p3)
}
 0x144   : > { %s522_s17 = smov 128   ;;  %s523_s24 = smov 8  }
 0x145   : > { %410 = dma.vmem_to_hbm [thread:$0]  (%p582_p5), %s307_s5, 256, %s309_s16, %s294_s6, %s522_s17, %s522_s17, %s523_s24  }
 0x146 PF: > { %p416_p4 = scmp.ge.s32.totalorder %s520_s15, 2  ;;  %s323_s25 = sand.u32 1, %s508_s12  }
 0x147   : > { %s324_s26 = scalar_lea.sflag [#allocation3], %s323_s25 }
 0x148   : > { %p413_p7 = pnand %p416_p4, %p586_p6 }
 0x14a   : > { %p414_p8 = pneg %p413_p7 }
 0x14c   : > { %503 = dma.done.wait (%p414_p8), %s324_s26, 256  }
 0x14d   : > { %505 = vsyncadd (%p414_p8), %s324_s26, 4294967040  ;;  %p13_p9 = scmp.ge.s32.totalorder %s569_s18, 4   ;;  %s665_s12 = smov %s512_s13 }
 0x14e   : > { %s666_s13 = smov %s516_s14  ;;  %s667_s14 = smov %s580_s21 }
 0x14f   : > { %s668_s15 = smov %s569_s18  ;;  %15 = sbr.rel (!%p13_p9) target bundleno = 3 (0x3), region = 67 }
 0x154   :  { %330 = vsyncpa [#allocation3], 1 }
 0x155   :  { %332 = vsyncpa [#allocation3 + $0x1], 1 }

</bundles_post_ra>
